<compile_context>
chip_gen: v5e
topology: v5e:2x2
jax: 0.10.0
libtpu: 0.0.40
codegen_flags: <defaults>
</compile_context>

<pallas_src>
import functools

import jax
import jax.numpy as jnp
from jax.experimental import pallas as pl
from jax.experimental.pallas import tpu as pltpu

_LANES = 1024                       # slab width: 8 * 128, lane-dense, unmasked vst
_TARGET_BLOCK_BYTES = 2 * 1024 * 1024  # ~2 MiB per buffer -> ~8 MiB resident
                                       # (in + out, double-buffered); safe on v5e/v6e/v7x


def _scale_kernel(x_ref, o_ref, *, scale, offset):
    # Single fused affine per vreg (mul + add); purely HBM-bandwidth bound.
    o_ref[...] = x_ref[...] * scale + offset


def scale_non_linearity(value, original_min, original_max, final_min, final_max):
    """Pallas TPU implementation of ScaleNonLinearity.forward."""
    scale = (float(final_max) - float(final_min)) / (
        float(original_max) - float(original_min))
    offset = float(final_min) - float(original_min) * scale

    orig_shape = value.shape
    dtype = value.dtype

    # Integer inputs: match PyTorch type promotion (int - float -> float32).
    if not jnp.issubdtype(dtype, jnp.floating):
        return value.astype(jnp.float32) * scale + offset

    flat = value.reshape(-1)
    n = flat.shape[0]

    bulk_rows = n // _LANES
    bulk_n = bulk_rows * _LANES
    tail_n = n - bulk_n

    if bulk_rows == 0:
        # Tiny input (< one slab row): not worth a kernel launch.
        return (flat * scale + offset).reshape(orig_shape)

    itemsize = jnp.dtype(dtype).itemsize
    # ~2 MiB per buffer; a multiple of 32 rows satisfies the sublane tiling for
    # f32 (8), bf16 (16) and int8/fp8 (32) alike.
    block_rows = max(32, (_TARGET_BLOCK_BYTES // (_LANES * itemsize)) // 32 * 32)
    if bulk_rows <= block_rows:
        # Full-extent block (equal to the array dims) is always a legal shape.
        block_rows = bulk_rows
        grid = (1,)
    else:
        # Non-divisible trailing block is padded/masked by Pallas -> no host-side
        # padding copy and no degenerate block shrinking.
        grid = (pl.cdiv(bulk_rows, block_rows),)

    slab = flat[:bulk_n].reshape(bulk_rows, _LANES)  # pure reshape, no pad copy

    kernel = functools.partial(_scale_kernel, scale=scale, offset=offset)

    bulk_out = pl.pallas_call(
        kernel,
        out_shape=jax.ShapeDtypeStruct((bulk_rows, _LANES), dtype),
        grid_spec=pltpu.PrefetchScalarGridSpec(
            num_scalar_prefetch=0,
            grid=grid,
            in_specs=[pl.BlockSpec((block_rows, _LANES), lambda i: (i, 0))],
            out_specs=pl.BlockSpec((block_rows, _LANES), lambda i: (i, 0)),
        ),
        compiler_params=pltpu.CompilerParams(
            dimension_semantics=("parallel",),   # shards across TCs on v7x
            vmem_limit_bytes=32 * 1024 * 1024,   # explicit; plenty of headroom
        ),
    )(slab)

    if tail_n == 0:
        return bulk_out.reshape(orig_shape)

    # Misaligned tail (< _LANES elements): plain jnp + one concat pass.
    tail_out = (flat[bulk_n:] * scale + offset).astype(dtype)
    return jnp.concatenate([bulk_out.reshape(-1), tail_out]).reshape(orig_shape)


def reference(value, original_min, original_max, final_min, final_max):
    original_scale = original_max - original_min
    final_scale = final_max - final_min
    return (value - original_min) * (final_scale / original_scale) + final_min


if __name__ == "__main__":
    key = jax.random.PRNGKey(0)
    original_min, original_max = -1.0, 1.0
    final_min, final_max = 0.0, 1.0

    fn = jax.jit(functools.partial(
        scale_non_linearity,
        original_min=original_min, original_max=original_max,
        final_min=final_min, final_max=final_max))

    # Aligned NCHW case (numel % 1024 == 0): pure kernel path, no tail.
    x = jax.random.uniform(key, (2, 4, 16, 16), dtype=jnp.float32,
                           minval=-1.0, maxval=1.0)
    out = jax.block_until_ready(fn(x))
    ref = reference(x, original_min, original_max, final_min, final_max)
    assert out.shape == x.shape and out.dtype == x.dtype
    assert jnp.allclose(out, ref, atol=1e-6, rtol=1e-6)

    # Misaligned case: kernel on the aligned bulk + jnp tail.
    key2 = jax.random.PRNGKey(1)
    y = jax.random.uniform(key2, (3, 5, 7, 11), dtype=jnp.float32,
                           minval=-1.0, maxval=1.0)
    out_y = jax.block_until_ready(fn(y))
    ref_y = reference(y, original_min, original_max, final_min, final_max)
    assert out_y.shape == y.shape and out_y.dtype == y.dtype
    assert jnp.allclose(out_y, ref_y, atol=1e-6, rtol=1e-6)

    print("KERNEL_OK")
</pallas_src>

<mosaic_0001>
module attributes {stable_mosaic.version = 11 : i64} {
  func.func @_scale_kernel(%arg0: i32, %arg1: memref<2x1024xf32, #tpu.memory_space<vmem>>, %arg2: memref<2x1024xf32, #tpu.memory_space<vmem>>) attributes {dimension_semantics = [#tpu.dimension_semantics<parallel>], iteration_bounds = array<i64: 1>, scalar_prefetch = 0 : i64, scratch_operands = 0 : i64, tpu.core_type = #tpu.core_type<tc>, window_params = [{transform_indices = @transform_0, window_bounds = array<i64: 2, 1024>}, {transform_indices = @transform_1, window_bounds = array<i64: 2, 1024>}]} {
    %c0 = arith.constant 0 : index
    %c0_0 = arith.constant 0 : index
    %0 = vector.load %arg1[%c0, %c0_0] : memref<2x1024xf32, #tpu.memory_space<vmem>>, vector<2x1024xf32>
    %cst = arith.constant 5.000000e-01 : f32
    %1 = vector.broadcast %cst : f32 to vector<2x1024xf32>
    %2 = arith.mulf %0, %1 : vector<2x1024xf32>
    %cst_1 = arith.constant 5.000000e-01 : f32
    %3 = vector.broadcast %cst_1 : f32 to vector<2x1024xf32>
    %4 = arith.addf %2, %3 : vector<2x1024xf32>
    %c0_2 = arith.constant 0 : index
    %c0_3 = arith.constant 0 : index
    %5 = vector.load %arg2[%c0_2, %c0_3] : memref<2x1024xf32, #tpu.memory_space<vmem>>, vector<2x1024xf32>
    tpu.vector_store %arg2[%c0_2, %c0_3], %4 {strides = array<i32>} : memref<2x1024xf32, #tpu.memory_space<vmem>>, vector<2x1024xf32>,
    return
  }
  func.func @transform_0(%arg0: i32) -> (i32, i32) {
    %c0_i32 = arith.constant 0 : i32
    %c0_i32_0 = arith.constant 0 : i32
    return %arg0, %c0_i32 : i32, i32
  }
  func.func @transform_1(%arg0: i32) -> (i32, i32) {
    %c0_i32 = arith.constant 0 : i32
    %c0_i32_0 = arith.constant 0 : i32
    return %arg0, %c0_i32 : i32, i32
  }
}

</mosaic_0001>

<bundles_post_ra>
// kernel: scale_non_linearity.1
= control target key start
LH: loop header
LB: loop body
LE: loop exit
PB: predicated region body
PF: predicated region fallthrough
CT: control target
= control target key end

     0   :  { %s42_s0 = inlined_call_operand.vmem [shape: f32[2,1024], index: 0, kind: input, shape index: {}]   ;;  %s43_s1 = inlined_call_operand.vmem [shape: f32[2,1024], index: 1, kind: output, shape index: {}]  }
   0x1   :  { %v8_v0 = vld [vmem:[%s42_s0] sm:$0xff]  ;;  %v9_v1 = vld [vmem:[%s42_s0 + $0x8] sm:$0xff] }
   0x2   :  { %v10_v2 = vmul.f32 0.5, %v8_v0  ;;  %v11_v3 = vmul.f32 0.5, %v9_v1 }
   0x4   :  { %v12_v4 = vadd.f32 0.5, %v10_v2  ;;  %v13_v5 = vadd.f32 0.5, %v11_v3 }
   0x6   :  { %14 = vst [vmem:[%s43_s1] sm:$0xff] %v12_v4 }
   0x7   :  { %15 = vst [vmem:[%s43_s1 + $0x8] sm:$0xff] %v13_v5 }

</bundles_post_ra>
